<compile_context>
chip_gen: v5e
topology: v5e:2x2
jax: 0.10.0
libtpu: 0.0.40
codegen_flags: <defaults>
</compile_context>

<pallas_src>
import jax
import jax.numpy as jnp
from jax.experimental import pallas as pl
from jax.experimental.pallas import tpu as pltpu


def _round_up(x, m):
    return ((x + m - 1) // m) * m


def _scene_coll_kernel(thr_ref, x_ref, w1_ref, b1_ref, w2_ref, b2_ref,
                       w3_ref, out_ref):
    """One lane-dense block of collision queries.

    thr_ref : (1,)       SMEM f32  logit-space threshold (b3 folded in)
    x_ref   : (F, Nblk)  bf16 query features (pos|rot), queries on lanes
    w1_ref  : (H, F)     bf16 W1^T (scene embedding folded into b1)
    b1_ref  : (H, 1)     bf16
    w2_ref  : (H, H)     bf16 W2^T
    b2_ref  : (H, 1)     bf16
    w3_ref  : (1, H)     bf16 classifier row
    out_ref : (1, Nblk)  bf16 0/1 collision mask, lane-dense
    """
    x = x_ref[...]                                                    # (F, Nblk)
    # MXU matmuls accumulate in f32, then bias+relu fused in bf16.
    h1 = jnp.maximum(
        jnp.dot(w1_ref[...], x,
                preferred_element_type=jnp.float32).astype(jnp.bfloat16)
        + b1_ref[...], 0.0)                                           # (H, Nblk) bf16
    h2 = jnp.maximum(
        jnp.dot(w2_ref[...], h1,
                preferred_element_type=jnp.float32).astype(jnp.bfloat16)
        + b2_ref[...], 0.0)                                           # (H, Nblk) bf16
    # Classifier head on the MXU: (1,H) @ (H,Nblk) -> (1,Nblk) f32 logits.
    raw = jnp.dot(w3_ref[...], h2, preferred_element_type=jnp.float32)
    thr = thr_ref[0]
    # sigmoid is monotone: OR of the two thresholds == compare against the
    # lower one, directly in logit space.  Emit a 0/1 mask (weight applied in
    # the wrapper after the link sum).
    out_ref[...] = (raw > thr).astype(out_ref.dtype)


def _choose_block(N, block_cols):
    """Pick the lane-block size and padded length."""
    n128 = _round_up(max(N, 1), 128)
    if block_cols is not None:
        nblk = min(_round_up(int(block_cols), 128), n128)
    else:
        # Large blocks amortize the ~0.35 us per-grid-step overhead.
        nblk = min(32768, n128)
        # v7x megacore: keep >= 2 grid steps on the "parallel" axis when the
        # problem is big enough (neutral on single-TC v5e/v6e).
        if n128 >= 256:
            half = max(128, (n128 // 2) // 128 * 128)
            nblk = min(nblk, half)
    n_pad = _round_up(N, nblk)
    return nblk, n_pad


def scene_collision_net_cost(link_pos_seq, link_rot_seq, params, *,
                             weight, threshold, threshold2=0.45,
                             block_cols=None):
    """cost[b, t] = weight * sum_links( collision_mask(b, t, link) )."""
    B, Hz, L, _ = link_pos_seq.shape
    N = B * Hz * L
    F = 12  # pos(3) + rot(9); scene embedding is folded into b1

    nblk, n_pad = _choose_block(N, block_cols)

    # Single bf16 marshalling pass: cast -> concat -> transpose -> pad.
    feat_t = jnp.concatenate(
        [link_pos_seq.reshape(N, 3).astype(jnp.bfloat16),
         link_rot_seq.reshape(N, 9).astype(jnp.bfloat16)], axis=-1).T  # (12, N)
    feat_t = jnp.pad(feat_t, ((0, 0), (0, n_pad - N)))                 # (12, n_pad)

    # Fold the constant scene embedding into the first-layer bias:
    #   b1' = b1 + scene_feat @ W1[12:, :]   and keep only W1[:12, :].
    w1 = params["w1"].astype(jnp.float32)                              # (12+S, H)
    b1_eff = params["b1"] + params["scene_feat"][None, :] @ w1[12:, :]  # (1, H)
    H = w1.shape[1]

    # Transposed, lane-dense operands (queries on lanes), all bf16.
    w1t = w1[:12, :].T.astype(jnp.bfloat16)                            # (H, 12)
    b1t = b1_eff.T.astype(jnp.bfloat16)                                # (H, 1)
    w2t = params["w2"].T.astype(jnp.bfloat16)                          # (H, H)
    b2t = params["b2"].T.astype(jnp.bfloat16)                          # (H, 1)
    w3r = params["w3"].astype(jnp.bfloat16)                            # (1, H)

    # OR of two thresholds on the same sigmoid == threshold at min(p1, p2);
    # compare in logit space with b3 folded in.  Clip keeps log finite.
    # TODO(synk): original torch forward references an undefined `res`; we take
    #             res = coll_mask.float() as the intended per-link result.
    p = jnp.clip(jnp.minimum(jnp.float32(threshold), jnp.float32(threshold2)),
                 1e-6, 1.0 - 1e-6)
    thr_logit = (jnp.log(p / (1.0 - p)) - params["b3"][0, 0]).astype(jnp.float32)
    thr_arr = thr_logit.reshape(1)                                     # (1,) SMEM

    # VMEM budget: ~0.5 KiB/column covers double-buffered feat/out blocks plus
    # bf16/f32 activation temps; clamp to <= 64 MiB so v7x is safe.
    vmem_est = nblk * 512 + (1 << 20)
    vmem_limit = int(min(64 << 20, max(32 << 20, vmem_est)))

    out = pl.pallas_call(
        _scene_coll_kernel,
        out_shape=jax.ShapeDtypeStruct((1, n_pad), jnp.bfloat16),
        grid=(n_pad // nblk,),
        in_specs=[
            pl.BlockSpec(memory_space=pltpu.MemorySpace.SMEM),  # [thr_logit]
            pl.BlockSpec((F, nblk), lambda i: (0, i)),          # query features
            pl.BlockSpec((H, F), lambda i: (0, 0)),             # W1^T
            pl.BlockSpec((H, 1), lambda i: (0, 0)),             # b1'
            pl.BlockSpec((H, H), lambda i: (0, 0)),             # W2^T
            pl.BlockSpec((H, 1), lambda i: (0, 0)),             # b2
            pl.BlockSpec((1, H), lambda i: (0, 0)),             # w3 row
        ],
        out_specs=pl.BlockSpec((1, nblk), lambda i: (0, i)),
        compiler_params=pltpu.CompilerParams(
            dimension_semantics=("parallel",),
            vmem_limit_bytes=vmem_limit),
    )(thr_arr, feat_t, w1t, b1t, w2t, b2t, w3r)

    # Sum the 0/1 per-link masks over links, then apply weight once.
    mask_sum = out[0, :N].astype(jnp.float32).reshape(B, Hz, L).sum(axis=-1)
    cost = jnp.asarray(weight, jnp.float32) * mask_sum
    # GaussianProjection(gaussian_params={}) is the identity mapping.
    return cost


def init_params(key, *, scene_dim=20, hidden=32):
    feat_dim = 3 + 9 + scene_dim
    ks = jax.random.split(key, 4)
    s1 = 1.0 / jnp.sqrt(jnp.float32(feat_dim))
    s2 = 1.0 / jnp.sqrt(jnp.float32(hidden))
    return {
        "scene_feat": 0.1 * jax.random.normal(ks[0], (scene_dim,), jnp.float32),
        "w1": s1 * jax.random.normal(ks[1], (feat_dim, hidden), jnp.float32),
        "b1": jnp.zeros((1, hidden), jnp.float32),
        "w2": s2 * jax.random.normal(ks[2], (hidden, hidden), jnp.float32),
        "b2": jnp.zeros((1, hidden), jnp.float32),
        "w3": s2 * jax.random.normal(ks[3], (1, hidden), jnp.float32),
        "b3": jnp.zeros((1, 1), jnp.float32),
    }


if __name__ == "__main__":
    key = jax.random.PRNGKey(0)
    k_pos, k_rot, k_par = jax.random.split(key, 3)

    B, Hz, L = 2, 8, 4        # batch, mpc horizon, robot collision links
    link_pos_seq = jax.random.normal(k_pos, (B, Hz, L, 3), jnp.float32)
    link_rot_seq = jax.random.normal(k_rot, (B, Hz, L, 3, 3), jnp.float32)

    params = init_params(k_par, scene_dim=20, hidden=32)

    weight = 100.0
    cost = scene_collision_net_cost(link_pos_seq, link_rot_seq, params,
                                    weight=weight, threshold=0.35,
                                    threshold2=0.45)
    jax.block_until_ready(cost)

    assert cost.shape == (B, Hz) and cost.dtype == jnp.float32
    # cost must be weight * (number of colliding links) in [0, weight*L]
    assert bool(jnp.all(jnp.isfinite(cost)))
    assert bool(jnp.all(cost >= 0.0)) and bool(jnp.all(cost <= weight * L))
    print("KERNEL_OK")
</pallas_src>

<mosaic_0001>
module attributes {stable_mosaic.version = 11 : i64} {
  func.func @_scene_coll_kernel(%arg0: i32, %arg1: memref<1xf32, #tpu.memory_space<smem>>, %arg2: memref<12x128xbf16, #tpu.memory_space<vmem>>, %arg3: memref<32x12xbf16, #tpu.memory_space<vmem>>, %arg4: memref<32x1xbf16, #tpu.memory_space<vmem>>, %arg5: memref<32x32xbf16, #tpu.memory_space<vmem>>, %arg6: memref<32x1xbf16, #tpu.memory_space<vmem>>, %arg7: memref<1x32xbf16, #tpu.memory_space<vmem>>, %arg8: memref<1x128xbf16, #tpu.memory_space<vmem>>) attributes {dimension_semantics = [#tpu.dimension_semantics<parallel>], iteration_bounds = array<i64: 1>, scalar_prefetch = 0 : i64, scratch_operands = 0 : i64, tpu.core_type = #tpu.core_type<tc>, window_params = [{transform_indices = @transform_0, window_bounds = array<i64: 1>}, {transform_indices = @transform_1, window_bounds = array<i64: 12, 128>}, {pipeline_mode = #tpu.pipeline_mode<synchronous>, transform_indices = @transform_2, window_bounds = array<i64: 32, 12>}, {pipeline_mode = #tpu.pipeline_mode<synchronous>, transform_indices = @transform_3, window_bounds = array<i64: 32, 1>}, {pipeline_mode = #tpu.pipeline_mode<synchronous>, transform_indices = @transform_4, window_bounds = array<i64: 32, 32>}, {pipeline_mode = #tpu.pipeline_mode<synchronous>, transform_indices = @transform_5, window_bounds = array<i64: 32, 1>}, {pipeline_mode = #tpu.pipeline_mode<synchronous>, transform_indices = @transform_6, window_bounds = array<i64: 1, 32>}, {transform_indices = @transform_7, window_bounds = array<i64: 1, 128>}]} {
    %c0 = arith.constant 0 : index
    %c0_0 = arith.constant 0 : index
    %0 = vector.load %arg2[%c0, %c0_0] : memref<12x128xbf16, #tpu.memory_space<vmem>>, vector<12x128xbf16>
    %c0_1 = arith.constant 0 : index
    %c0_2 = arith.constant 0 : index
    %1 = vector.load %arg3[%c0_1, %c0_2] : memref<32x12xbf16, #tpu.memory_space<vmem>>, vector<32x12xbf16>
    %cst = arith.constant dense<0.000000e+00> : vector<32x128xf32>
    %2 = tpu.matmul %1, %0, %cst {dimension_numbers = #tpu.dot_dimension_numbers<[1], [0], [0], [1], [0, 0, 1, 1], [], []>} : vector<32x12xbf16>, vector<12x128xbf16>, vector<32x128xf32> -> vector<32x128xf32>
    %3 = arith.truncf %2 : vector<32x128xf32> to vector<32x128xbf16>
    %c0_3 = arith.constant 0 : index
    %c0_4 = arith.constant 0 : index
    %4 = vector.load %arg4[%c0_3, %c0_4] : memref<32x1xbf16, #tpu.memory_space<vmem>>, vector<32x1xbf16>
    %5 = vector.broadcast %4 : vector<32x1xbf16> to vector<32x128xbf16>
    %6 = arith.addf %3, %5 : vector<32x128xbf16>
    %cst_5 = arith.constant 0.000000e+00 : bf16
    %7 = vector.broadcast %cst_5 : bf16 to vector<32x128xbf16>
    %8 = arith.maximumf %6, %7 : vector<32x128xbf16>
    %c0_6 = arith.constant 0 : index
    %c0_7 = arith.constant 0 : index
    %9 = vector.load %arg5[%c0_6, %c0_7] : memref<32x32xbf16, #tpu.memory_space<vmem>>, vector<32x32xbf16>
    %cst_8 = arith.constant dense<0.000000e+00> : vector<32x128xf32>
    %10 = tpu.matmul %9, %8, %cst_8 {dimension_numbers = #tpu.dot_dimension_numbers<[1], [0], [0], [1], [0, 0, 1, 1], [], []>} : vector<32x32xbf16>, vector<32x128xbf16>, vector<32x128xf32> -> vector<32x128xf32>
    %11 = arith.truncf %10 : vector<32x128xf32> to vector<32x128xbf16>
    %c0_9 = arith.constant 0 : index
    %c0_10 = arith.constant 0 : index
    %12 = vector.load %arg6[%c0_9, %c0_10] : memref<32x1xbf16, #tpu.memory_space<vmem>>, vector<32x1xbf16>
    %13 = vector.broadcast %12 : vector<32x1xbf16> to vector<32x128xbf16>
    %14 = arith.addf %11, %13 : vector<32x128xbf16>
    %cst_11 = arith.constant 0.000000e+00 : bf16
    %15 = vector.broadcast %cst_11 : bf16 to vector<32x128xbf16>
    %16 = arith.maximumf %14, %15 : vector<32x128xbf16>
    %c0_12 = arith.constant 0 : index
    %c0_13 = arith.constant 0 : index
    %17 = vector.load %arg7[%c0_12, %c0_13] : memref<1x32xbf16, #tpu.memory_space<vmem>>, vector<1x32xbf16>
    %cst_14 = arith.constant dense<0.000000e+00> : vector<1x128xf32>
    %18 = tpu.matmul %17, %16, %cst_14 {dimension_numbers = #tpu.dot_dimension_numbers<[1], [0], [0], [1], [0, 0, 1, 1], [], []>} : vector<1x32xbf16>, vector<32x128xbf16>, vector<1x128xf32> -> vector<1x128xf32>
    %c0_15 = arith.constant 0 : index
    %19 = memref.load %arg1[%c0_15] : memref<1xf32, #tpu.memory_space<smem>>
    %20 = vector.broadcast %19 : f32 to vector<1x128xf32>
    %21 = arith.cmpf ogt, %18, %20 : vector<1x128xf32>
    %22 = arith.extui %21 : vector<1x128xi1> to vector<1x128xi32>
    %23 = arith.sitofp %22 : vector<1x128xi32> to vector<1x128xf32>
    %24 = arith.truncf %23 : vector<1x128xf32> to vector<1x128xbf16>
    %c0_16 = arith.constant 0 : index
    %c0_17 = arith.constant 0 : index
    %25 = vector.load %arg8[%c0_16, %c0_17] : memref<1x128xbf16, #tpu.memory_space<vmem>>, vector<1x128xbf16>
    tpu.vector_store %arg8[%c0_16, %c0_17], %24 {strides = array<i32>} : memref<1x128xbf16, #tpu.memory_space<vmem>>, vector<1x128xbf16>,
    return
  }
  func.func @transform_0(%arg0: i32) -> i32 {
    %c0_i32 = arith.constant 0 : i32
    %c0_i32_0 = arith.constant 0 : i32
    return %c0_i32 : i32
  }
  func.func @transform_1(%arg0: i32) -> (i32, i32) {
    %c0_i32 = arith.constant 0 : i32
    %c0_i32_0 = arith.constant 0 : i32
    return %c0_i32, %arg0 : i32, i32
  }
  func.func @transform_2(%arg0: i32) -> (i32, i32) {
    %c0_i32 = arith.constant 0 : i32
    %c0_i32_0 = arith.constant 0 : i32
    %c0_i32_1 = arith.constant 0 : i32
    return %c0_i32, %c0_i32_0 : i32, i32
  }
  func.func @transform_3(%arg0: i32) -> (i32, i32) {
    %c0_i32 = arith.constant 0 : i32
    %c0_i32_0 = arith.constant 0 : i32
    %c0_i32_1 = arith.constant 0 : i32
    return %c0_i32, %c0_i32_0 : i32, i32
  }
  func.func @transform_4(%arg0: i32) -> (i32, i32) {
    %c0_i32 = arith.constant 0 : i32
    %c0_i32_0 = arith.constant 0 : i32
    %c0_i32_1 = arith.constant 0 : i32
    return %c0_i32, %c0_i32_0 : i32, i32
  }
  func.func @transform_5(%arg0: i32) -> (i32, i32) {
    %c0_i32 = arith.constant 0 : i32
    %c0_i32_0 = arith.constant 0 : i32
    %c0_i32_1 = arith.constant 0 : i32
    return %c0_i32, %c0_i32_0 : i32, i32
  }
  func.func @transform_6(%arg0: i32) -> (i32, i32) {
    %c0_i32 = arith.constant 0 : i32
    %c0_i32_0 = arith.constant 0 : i32
    %c0_i32_1 = arith.constant 0 : i32
    return %c0_i32, %c0_i32_0 : i32, i32
  }
  func.func @transform_7(%arg0: i32) -> (i32, i32) {
    %c0_i32 = arith.constant 0 : i32
    %c0_i32_0 = arith.constant 0 : i32
    return %c0_i32, %arg0 : i32, i32
  }
}

</mosaic_0001>

<bundles_post_ra>
// kernel: tpu_custom_call.1
= control target key start
LH: loop header
LB: loop body
LE: loop exit
PB: predicated region body
PF: predicated region fallthrough
CT: control target
= control target key end

     0   :  { %vm57_vm0 = vcmask 1045504   ;;  %v371_v5 = vmov 0   ;;  %vm50_vm1 = vcmask 97280   ;;  %s479_s0 = inlined_call_operand.<no memory space> [shape: f32[1], index: 0, kind: input, shape index: {}]   ;;  %s480_s1 = inlined_call_operand.vmem [shape: bf16[12,128], index: 1, kind: input, shape index: {}]   ;;  %s481_s2 = inlined_call_operand.vmem [shape: bf16[32,12], index: 2, kind: input, shape index: {}]   ;;  %s482_s3 = inlined_call_operand.vmem [shape: bf16[32,1], index: 3, kind: input, shape index: {}]   ;;  %s483_s4 = inlined_call_operand.vmem [shape: bf16[32,32], index: 4, kind: input, shape index: {}]   ;;  %s484_s5 = inlined_call_operand.vmem [shape: bf16[32,1], index: 5, kind: input, shape index: {}]   ;;  %s485_s6 = inlined_call_operand.vmem [shape: bf16[1,32], index: 6, kind: input, shape index: {}]   ;;  %s486_s7 = inlined_call_operand.hbm [shape: bf16[1,128], index: 7, kind: output, shape index: {}]  }
   0x1   :  { %v315_v0 = vld [vmem:[%s480_s1] sm:$0xf]  ;;  %v331_v1 = vld [vmem:[%s480_s1] sm:$0x30]  ;;  %v86_v3 = vld [vmem:[%s482_s3 + $0x8] sm:$0xf]  ;;  %343 = vset.pattern.permute.xlu1 %v371_v5  ;;  %342 = vset.pattern.permute.xlu0 %v371_v5 }
   0x2   :  { %v316_v2 = vor.u32 %v331_v1, %v315_v0  ;;  %v84_v4 = vld [vmem:[%s482_s3] sm:$0xf]  ;;  %108 = vperm.xlu0 %342, %v86_v3   ;;  %344 = vset.pattern.permute.xlu2 %v371_v5 }
   0x3   :  { %v332_v7 = vld [vmem:[%s481_s2] sm:$0xff]  ;;  %90 = vperm.xlu1 %343, %v84_v4  }
   0x4   :  { %v59_v6 = vsel %vm57_vm0, %v316_v2, 0 }
   0x5   :  { %68 = vmatpush.bf16.msra.mxu0 %v59_v6 }
   0x6   :  { %13 = vsyncpa [#allocation4], 0  ;;  %v87_v8 = vld [vmem:[%s482_s3 + $0xc] sm:$0xf]  ;;  %v85_v9 = vld [vmem:[%s482_s3 + $0x4] sm:$0xf] }
   0x7   :  { %v194_v10 = vld [vmem:[%s484_s5] sm:$0xf]  ;;  %v195_v11 = vld [vmem:[%s484_s5 + $0x4] sm:$0xf]  ;;  %v333_v12 = vld [vmem:[%s481_s2 + $0x8] sm:$0xff]  ;;  %vm164_vm2 = vcmask 261120  }
   0x8   :  { %317 = vmatmul.msk.bf16.vlgmr.msra.gmra.mxu0 %vm50_vm1, %v332_v7  ;;  %v196_v16 = vld [vmem:[%s484_s5 + $0x8] sm:$0xf]  ;;  %v372_v18 = vmov 839922192   ;;  %v197_v21 = vld [vmem:[%s484_s5 + $0xc] sm:$0xf] }
   0x9   :  { %218 = vperm.xlu2 %344, %v196_v16   ;;  %v94_v19 = vunpack.c.l.s4 %v372_v18  ;;  %v334_v52 = vld [vmem:[%s483_s4] sm:$0xff]  ;;  %v335_v53 = vld [vmem:[%s483_s4 + $0x8] sm:$0xff]  ;;  %vm283_vm3 = vcmask 1040384   ;;  %vm284_vm4 = vsmask.f32 256  ;;  %s373_s28 = smov [#allocation3]  }
   0xa   :  { %117 = vperm.xlu0 %342, %v87_v8   ;;  %s294_s29 = sshll.u32 %s373_s28, 4  ;;  %s296_s9 = sshll.u32 %s486_s7, 4  ;;  %vm285_vm6 = vmand %vm283_vm3, %vm284_vm4  ;;  %s295_s29 = int_to_ptr.vmem [resolvable:$true] %s294_s29  ;;  %s297_s9 = int_to_ptr.hbm [resolvable:$true] %s296_s9 }
   0xb   :  { %99 = vperm.xlu1 %343, %v85_v9   ;;  %v451_v22 = vunpack.c.0.s8 %v94_v19 }
  0x11   :  { %227 = vperm.xlu2 %344, %v197_v21  }
  0x12   :  { %200 = vperm.xlu0 %342, %v194_v10  }
  0x13   :  { %209 = vperm.xlu1 %343, %v195_v11  }
  0x18   :  { %318 = vmatmul.msk.bf16.gmra.mxu0 %vm50_vm1, %v333_v12 }
  0x63   :  { %v219_v54 = vpop.permute.xlu2 %218 }
  0x64   :  { %v224_v59 = vperm.slane %v219_v54, %v451_v22 }
  0x66   :  { %v240_v1 = vunpack.c.l.bf16 %v224_v59 }
  0x6b   :  { %v228_v61 = vpop.permute.xlu2 %227 }
  0x6c   :  { %v233_v3 = vperm.slane %v228_v61, %v451_v22 }
  0x6e   :  { %v241_v11 = vunpack.c.l.bf16 %v233_v3 }
  0x74   :  { %v109_v17 = vpop.permute.xlu0 %108 }
  0x75   :  { %v91_v14 = vpop.permute.xlu1 %90  ;;  %v114_v24 = vperm.slane %v109_v17, %v451_v22 }
  0x76   :  { %v96_v28 = vperm.slane %v91_v14, %v451_v22 }
  0x77   :  { %v130_v30 = vunpack.c.l.bf16 %v114_v24 }
  0x78   :  { %v128_v38 = vunpack.c.l.bf16 %v96_v28 }
  0x7c   :  { %v118_v29 = vpop.permute.xlu0 %117 }
  0x7d   :  { %v100_v23 = vpop.permute.xlu1 %99  ;;  %v123_v32 = vperm.slane %v118_v29, %v451_v22  ;;  %v286_v29 = vld [vmem:[#allocation3] sm:$0x1] }
  0x7e   :  { %v105_v26 = vperm.slane %v100_v23, %v451_v22 }
  0x7f   :  { %v131_v40 = vunpack.c.l.bf16 %v123_v32 }
  0x80   :  { %v129_v35 = vunpack.c.l.bf16 %v105_v26 }
  0x84   :  { %v201_v63 = vpop.permute.xlu0 %200 }
  0x85   :  { %v70_v13 = vpop.f32.mrf.mxu0  ;;  %v210_v58 = vpop.permute.xlu1 %209  ;;  %v206_v6 = vperm.slane %v201_v63, %v451_v22 }
  0x86   :  { %v80_v31 = vpack.c.bf16 %v70_v13, %v70_v13  ;;  %v215_v0 = vperm.slane %v210_v58, %v451_v22  ;;  %v260_v22 = vld [vmem:[%s485_s6] sm:$0x1] }
  0x87   :  { %v238_v14 = vunpack.c.l.bf16 %v206_v6 }
  0x88   :  { %v124_v39 = vunpack.c.l.bf16 %v80_v31  ;;  %v239_v9 = vunpack.c.l.bf16 %v215_v0 }
  0x8a   :  { %v132_v45 = vadd.f32 %v128_v38, %v124_v39 }
  0x8c   :  { %v144_v50 = vmax.f32 %v132_v45, 0.0 }
  0x8d   :  { %v72_v15 = vpop.f32.mrf.mxu0 }
  0x8e   :  { %v81_v27 = vpack.c.bf16 %v72_v15, %v72_v15 }
  0x90   :  { %v125_v36 = vunpack.c.l.bf16 %v81_v27  ;;  %v374_v27 = vmov 0.0  }
  0x92   :  { %v133_v43 = vadd.f32 %v129_v35, %v125_v36 }
  0x94   :  { %v145_v49 = vmax.f32 %v133_v43, 0.0 }
  0x95   :  { %v75_v20 = vpop.f32.mrf.mxu0 }
  0x96   :  { %v82_v25 = vpack.c.bf16 %v75_v20, %v75_v20  ;;  %v148_v51 = vpack.c.bf16 %v145_v49, %v144_v50 }
  0x98   :  { %v126_v33 = vunpack.c.l.bf16 %v82_v25  ;;  %v278_v25 = vstv %s479_s0 }
  0x9a   :  { %v134_v41 = vadd.f32 %v130_v30, %v126_v33 }
  0x9c   :  { %v146_v47 = vmax.f32 %v134_v41, 0.0 }
  0x9d   :  { %v77_v34 = vpop.f32.mrf.mxu0 }
  0x9e   :  { %v83_v37 = vpack.c.bf16 %v77_v34, %v77_v34 }
  0xa0   :  { %v127_v42 = vunpack.c.l.bf16 %v83_v37 }
  0xa2   :  { %v135_v44 = vadd.f32 %v131_v40, %v127_v42 }
  0xa4   :  { %v147_v46 = vmax.f32 %v135_v44, 0.0 }
  0xa6   :  { %v149_v48 = vpack.c.bf16 %v147_v46, %v146_v47 }
  0xa8   :  { %177 = vmatpush.bf16.msra.mxu1 %v149_v48  ;;  %336 = vmatpush.bf16.msra.mxu3 %v149_v48 }
  0xac   :  { %178 = vmatpush.bf16.msra.mxu1 %v148_v51  ;;  %337 = vmatpush.bf16.msra.mxu3 %v148_v51 }
  0xaf   :  { %327 = vmatmul.msk.bf16.vlgmr.msra.gmra.mxu1 %vm164_vm2, %v334_v52  ;;  %328 = vmatmul.msk.bf16.vlgmr.msra.gmra.mxu3 %vm164_vm2, %v335_v53 }
 0x12c   :  { %v180_v55 = vpop.f32.mrf.mxu1 }
 0x12d   :  { %v190_v2 = vpack.c.bf16 %v180_v55, %v180_v55 }
 0x12f   :  { %v234_v10 = vunpack.c.l.bf16 %v190_v2 }
 0x131   :  { %v242_v17 = vadd.f32 %v238_v14, %v234_v10 }
 0x132   :  { %v185_v56 = vpop.f32.mrf.mxu3 }
 0x133   :  { %v192_v60 = vpack.c.bf16 %v185_v56, %v185_v56  ;;  %v254_v23 = vmax.f32 %v242_v17, 0.0 }
 0x134   :  { %v182_v57 = vpop.f32.mrf.mxu1 }
 0x135   :  { %v191_v62 = vpack.c.bf16 %v182_v57, %v182_v57  ;;  %v236_v4 = vunpack.c.l.bf16 %v192_v60 }
 0x137   :  { %v235_v7 = vunpack.c.l.bf16 %v191_v62  ;;  %v244_v13 = vadd.f32 %v240_v1, %v236_v4 }
 0x139   :  { %v243_v15 = vadd.f32 %v239_v9, %v235_v7  ;;  %v256_v18 = vmax.f32 %v244_v13, 0.0 }
 0x13a   :  { %v187_v5 = vpop.f32.mrf.mxu3 }
 0x13b   :  { %v193_v8 = vpack.c.bf16 %v187_v5, %v187_v5  ;;  %v255_v20 = vmax.f32 %v243_v15, 0.0 }
 0x13d   :  { %v237_v12 = vunpack.c.l.bf16 %v193_v8  ;;  %v258_v24 = vpack.c.bf16 %v255_v20, %v254_v23 }
 0x13f   :  { %v245_v16 = vadd.f32 %v241_v11, %v237_v12 }
 0x141   :  { %v257_v19 = vmax.f32 %v245_v16, 0.0 }
 0x143   :  { %v259_v21 = vpack.c.bf16 %v257_v19, %v256_v18 }
 0x145   :  { %270 = vmatpush.bf16.msra.mxu2 %v259_v21 }
 0x149   :  { %271 = vmatpush.bf16.msra.mxu2 %v258_v24 }
 0x14c   :  { %329 = vmatmul.msk.bf16.vlgmr.msra.gmra.mxu2 %vm164_vm2, %v260_v22 }
 0x1cf   :  { %v273_v26 = vpop.f32.mrf.mxu2 }
 0x1d0   :  { %vm279_vm5 = vcmp.gt.f32.partialorder %v273_v26, %v278_v25 }
 0x1d1   :  { %v330_v28 = vsel %vm279_vm5, 1.0, %v374_v27 }
 0x1d2   :  { %v282_v30 = vpack.c.bf16 %v330_v28, %v330_v28 }
 0x1d4   :  { %v287_v31 = vsel %vm285_vm6, %v282_v30, %v286_v29 }
 0x1d5   :  { %288 = vst [vmem:[#allocation3] sm:$0x1] %v287_v31 }
 0x1d6   :  { %299 = dma.vmem_to_hbm [thread:$0]  %s295_s29, 16, %s297_s9, [#allocation4]  }
 0x1d7   :  { %v275_v32 = vpop.f32.mrf.mxu2 }
 0x1d8   :  { %369 = dma.done.wait [#allocation4], 16  }
 0x1d9   :  { %370 = vsyncadd [#allocation4], 4294967280 }
 0x1da   :  { %304 = vsyncpa [#allocation4], 1 }

</bundles_post_ra>
